<compile_context>
chip_gen: v7x
topology: tpu7x:2x2x1
jax: 0.10.0
libtpu: 0.0.40
codegen_flags: <defaults>
</compile_context>

<pallas_src>
import jax
import jax.numpy as jnp
from jax import lax
from jax.experimental import pallas as pl
from jax.experimental.pallas import tpu as pltpu

# Representative wrapped-model configuration.
CIN = 4
COUT = 8
KH = KW = 3
PAD = 1

K = KH * KW * CIN            # 36 im2col taps
K_PAD = 40                   # 36 taps + 1 bias row + 3 zero rows (multiple of 8)


def _dp_shard_kernel(w_ref, p_ref, o_ref):
    """One data-parallel shard: Conv2d(3x3, pad=1)+ReLU as a single GEMM.

    w_ref: (COUT, K_PAD)            bf16 weights (+bias column, +zero pad)
    p_ref: (K_PAD, tile_b * H*W)    bf16 lane-dense im2col patches (+ones row)
    o_ref: (COUT, tile_b * H*W)     f32 lane-dense output shard
    """
    acc = jnp.dot(w_ref[...], p_ref[...], preferred_element_type=jnp.float32)
    o_ref[...] = jnp.maximum(acc, 0.0).astype(o_ref.dtype)


def _pick_tile_b(batch, hw):
    """Images per grid step.

    As large as the double-buffered VMEM budget allows (per-generation safe:
    fits the default scoped limit on v5e/v6e/v7x), while preferring an even
    grid with >=4 steps (v7x shards the "parallel" axis across 2 TensorCores;
    >=2 steps per core keeps the pipeline busy).
    """
    # bf16 patches (K_PAD rows pad to 48 sublanes) + f32 output, double-buffered.
    per_image = 2 * (48 * hw * 2 + COUT * hw * 4)
    cap = max(1, (12 << 20) // per_image)
    divisors = [t for t in range(1, batch + 1) if batch % t == 0 and t <= cap]
    for ok in (lambda g: g >= 4 and g % 2 == 0,   # ideal: even grid, >=2 steps/TC
               lambda g: g >= 2,                  # fallback: at least 2 steps
               lambda g: True):                   # last resort: single step
        cands = [t for t in divisors if ok(batch // t)]
        if cands:
            return max(cands)
    return batch


def custom_data_parallel_forward(x_nchw, w_oihw, bias):
    """Equivalent of CustomDataParallel(Conv2d+ReLU)(x) for NCHW input."""
    B, Cin, H, W = x_nchw.shape
    Cout = w_oihw.shape[0]
    hw = H * W

    # ---- wrapper-side layout plumbing (XLA, not in-kernel) ----------------
    # im2col: 9 strided slices of the zero-padded input, stacked along K with
    # (kh, kw, cin) ordering, batch folded into the lane axis -> (K, B*H*W).
    x_pad = jnp.pad(x_nchw, ((0, 0), (0, 0), (PAD, PAD), (PAD, PAD)))
    taps = jnp.stack([x_pad[:, :, kh:kh + H, kw:kw + W]
                      for kh in range(KH) for kw in range(KW)], axis=0)
    # (9, B, Cin, H, W) -> (9, Cin, B, H, W) -> (K, B*H*W); K index =
    # (kh*KW + kw)*Cin + cin, lane index = b*H*W + h*W + w.
    p36 = jnp.transpose(taps, (0, 2, 1, 3, 4)).reshape(K, B * hw)
    ones_row = jnp.ones((1, B * hw), p36.dtype)               # bias row
    pad_rows = jnp.zeros((K_PAD - K - 1, B * hw), p36.dtype)  # align K to 8
    patches = jnp.concatenate([p36, ones_row, pad_rows],
                              axis=0).astype(jnp.bfloat16)

    # Weight (O,I,H,W) -> (O, (kh,kw,cin)) + bias column + zero pad columns.
    w_flat = jnp.transpose(w_oihw, (0, 2, 3, 1)).reshape(Cout, K)
    w_aug = jnp.concatenate(
        [w_flat, bias.reshape(Cout, 1),
         jnp.zeros((Cout, K_PAD - K - 1), w_flat.dtype)],
        axis=1).astype(jnp.bfloat16)

    tile_b = _pick_tile_b(B, hw)
    grid_b = B // tile_b
    lanes_per_step = tile_b * hw
    assert lanes_per_step % 128 == 0, "per-step lane count must be 128-aligned"

    out2d = pl.pallas_call(
        _dp_shard_kernel,
        out_shape=jax.ShapeDtypeStruct((Cout, B * hw), jnp.float32),
        grid_spec=pltpu.PrefetchScalarGridSpec(
            num_scalar_prefetch=0,
            # grid axis 0 == the data-parallel scatter along dim=0 (batch).
            grid=(grid_b,),
            in_specs=[
                # Constant index_map: tiny weight block stays VMEM-resident,
                # no per-step re-DMA.
                pl.BlockSpec((Cout, K_PAD), lambda i: (0, 0)),
                pl.BlockSpec((K_PAD, lanes_per_step), lambda i: (0, i)),
            ],
            # Lane-dense gather of the shard outputs (dim 0 of the batch
            # after the wrapper reshape below).
            out_specs=pl.BlockSpec((Cout, lanes_per_step), lambda i: (0, i)),
        ),
        compiler_params=pltpu.CompilerParams(
            # "parallel" over batch mirrors DataParallel's replica sharding.
            dimension_semantics=("parallel",),
            vmem_limit_bytes=32 * 1024 * 1024,
        ),
    )(w_aug, patches)

    # (Cout, B*H*W) -> (B, Cout, H, W): wrapper-side layout plumbing.
    return jnp.transpose(out2d.reshape(Cout, B, H, W), (1, 0, 2, 3))


def _reference(x_nchw, w_oihw, bias):
    out = lax.conv_general_dilated(
        x_nchw, w_oihw,
        window_strides=(1, 1),
        padding=((PAD, PAD), (PAD, PAD)),
        dimension_numbers=("NCHW", "OIHW", "NCHW"),
    )
    out = out + bias.reshape(1, -1, 1, 1)
    return jnp.maximum(out, 0.0)


if __name__ == "__main__":
    key = jax.random.PRNGKey(0)
    kx, kw, kb = jax.random.split(key, 3)

    # Small shapes consistent with the module's forward (batch dim 0 is the
    # data-parallel scatter axis).
    x = jax.random.normal(kx, (2, CIN, 16, 16), dtype=jnp.float32)
    # Deterministic in-script parameter init (no checkpoint load).
    w = jax.random.normal(kw, (COUT, CIN, KH, KW), dtype=jnp.float32) * 0.1
    b = jax.random.normal(kb, (COUT,), dtype=jnp.float32) * 0.1

    out = jax.block_until_ready(custom_data_parallel_forward(x, w, b))
    ref = jax.block_until_ready(_reference(x, w, b))

    assert out.shape == ref.shape, (out.shape, ref.shape)
    # bf16 MXU operands (f32 accumulate) -> loosened tolerance vs f32 ref.
    max_err = float(jnp.max(jnp.abs(out - ref)))
    assert jnp.allclose(out, ref, atol=2e-2, rtol=2e-2), f"max err {max_err}"

    # TODO(synk): true multi-device scatter/gather (torch DataParallel across
    # chips) would use shard_map / remote DMA; on one chip the "parallel" grid
    # axis reproduces the same numerics (and uses both TCs on v7x).
    print("KERNEL_OK")
</pallas_src>

<mosaic_0001>
module attributes {stable_mosaic.version = 11 : i64} {
  func.func @_dp_shard_kernel(%arg0: i32, %arg1: memref<8x40xbf16, #tpu.memory_space<vmem>>, %arg2: memref<40x256xbf16, #tpu.memory_space<vmem>>, %arg3: memref<8x256xf32, #tpu.memory_space<vmem>>) attributes {dimension_semantics = [#tpu.dimension_semantics<parallel>], iteration_bounds = array<i64: 2>, scalar_prefetch = 0 : i64, scratch_operands = 0 : i64, tpu.core_type = #tpu.core_type<tc>, window_params = [{pipeline_mode = #tpu.pipeline_mode<synchronous>, transform_indices = @transform_0, window_bounds = array<i64: 8, 40>}, {transform_indices = @transform_1, window_bounds = array<i64: 40, 256>}, {transform_indices = @transform_2, window_bounds = array<i64: 8, 256>}]} {
    %c0 = arith.constant 0 : index
    %c0_0 = arith.constant 0 : index
    %0 = vector.load %arg1[%c0, %c0_0] : memref<8x40xbf16, #tpu.memory_space<vmem>>, vector<8x40xbf16>
    %c0_1 = arith.constant 0 : index
    %c0_2 = arith.constant 0 : index
    %1 = vector.load %arg2[%c0_1, %c0_2] : memref<40x256xbf16, #tpu.memory_space<vmem>>, vector<40x256xbf16>
    %cst = arith.constant dense<0.000000e+00> : vector<8x256xf32>
    %2 = tpu.matmul %0, %1, %cst {dimension_numbers = #tpu.dot_dimension_numbers<[1], [0], [0], [1], [0, 0, 1, 1], [], []>} : vector<8x40xbf16>, vector<40x256xbf16>, vector<8x256xf32> -> vector<8x256xf32>
    %cst_3 = arith.constant 0.000000e+00 : f32
    %3 = vector.broadcast %cst_3 : f32 to vector<8x256xf32>
    %4 = arith.maximumf %2, %3 : vector<8x256xf32>
    %c0_4 = arith.constant 0 : index
    %c0_5 = arith.constant 0 : index
    %5 = vector.load %arg3[%c0_4, %c0_5] : memref<8x256xf32, #tpu.memory_space<vmem>>, vector<8x256xf32>
    tpu.vector_store %arg3[%c0_4, %c0_5], %4 {strides = array<i32>} : memref<8x256xf32, #tpu.memory_space<vmem>>, vector<8x256xf32>,
    return
  }
  func.func @transform_0(%arg0: i32) -> (i32, i32) {
    %c0_i32 = arith.constant 0 : i32
    %c0_i32_0 = arith.constant 0 : i32
    %c0_i32_1 = arith.constant 0 : i32
    return %c0_i32, %c0_i32_0 : i32, i32
  }
  func.func @transform_1(%arg0: i32) -> (i32, i32) {
    %c0_i32 = arith.constant 0 : i32
    %c0_i32_0 = arith.constant 0 : i32
    return %c0_i32, %arg0 : i32, i32
  }
  func.func @transform_2(%arg0: i32) -> (i32, i32) {
    %c0_i32 = arith.constant 0 : i32
    %c0_i32_0 = arith.constant 0 : i32
    return %c0_i32, %arg0 : i32, i32
  }
}

</mosaic_0001>

<bundles_post_ra>
// kernel: tpu_custom_call.1
= control target key start
LH: loop header
LB: loop body
LE: loop exit
PB: predicated region body
PF: predicated region fallthrough
CT: control target
= control target key end

     0   :  { %7 = vsyncpa [#allocation3], 0  ;;  %s806_s0 = inlined_call_operand.hbm [shape: bf16[8,40], index: 0, kind: input, shape index: {}]   ;;  %s807_s1 = inlined_call_operand.hbm [shape: bf16[40,512], index: 1, kind: input, shape index: {}]   ;;  %s808_s2 = inlined_call_operand.hbm [shape: f32[8,512], index: 2, kind: output, shape index: {}]  }
   0x1   :  { %8 = vsyncpa [#allocation6], 0 }
   0x2   :  { %10 = vsyncpa [#allocation6 + $0x1], 0 }
   0x3   :  { %11 = vsyncpa [#allocation4], 0 }
   0x4   :  { %13 = vsyncpa [#allocation4 + $0x1], 0  ;;  %s609_s9 = smov 0   ;;  %s611_s10 = smov 0  }
   0x5   :  { %s613_s11 = smov 0   ;;  %s615_s12 = smov 0  }
   0x6 LB: > { %s630_s13 = sadd.s32 4294967295, %s585_s12   ;;  %s362_s14 = sadd.s32 4294967294, %s585_s12   ;;  %s585_s12 = sphi %s615_s12, %s833_s12   ;;  %s581_s11 = sphi %s613_s11, %s832_s11   ;;  %s577_s10 = sphi %s611_s10, %s831_s10   ;;  %s573_s9 = sphi %s609_s9, %s830_s9  }
   0x7   : > { %s634_s15 = sadd.s32 1, %s585_s12   ;;  %s47_s16 = sadd.s32 1, %s581_s11 }
   0x8   : > { %s44_s17 = ssub.s32 %s585_s12, %s634_s15  ;;  %p54_p0 = scmp.ne.s32.totalorder %s581_s11, %s577_s10 }
   0x9   : > { %p45_p1 = scmp.eq.s32.totalorder %s44_s17, 0  ;;  %p55_p2 = scmp.eq.s32.totalorder %s585_s12, 0 }
   0xa   : > { %p60_p3 = scmp.ne.s32.totalorder %s577_s10, %s573_s9  ;;  %p809_p4 = scmp.eq.s32.totalorder %s630_s13, 0 }
   0xb   : > { %s646_s18 = scalar_select %p45_p1, %s581_s11, %s47_s16  }
   0xc   : > { %p648_p5 = por %p55_p2, %p54_p0  ;;  %p654_p6 = por %p809_p4, %p60_p3 }
   0xd   : > { %p84_p7 = scmp.eq.s32.totalorder %s630_s13, 1  ;;  %p90_p8 = scmp.eq.s32.totalorder %s362_s14, 1 }
   0xe   : > { %s815_s20 = scalar_select %p654_p6, 1, 0 }
   0xf   : > { %p363_p9 = scmp.ge.s32.totalorder %s585_s12, 1  ;;  %p97_p10 = scmp.lt.s32.totalorder %s585_s12, 3 }
  0x10   : > { %p661_p11 = por %p84_p7, %p54_p0  ;;  %p665_p12 = por %p90_p8, %p60_p3 }
  0x11   : > { %p669_p13 = pnand %p363_p9, %p97_p10  ;;  %s587_s24 = smov [#allocation2]  }
  0x12   : > { %s816_s21 = scalar_select %p661_p11, 1, 0 }
  0x13   : > { %s817_s22 = scalar_select %p665_p12, 1, 0 }
  0x14   : > { %s818_s23 = scalar_select %p669_p13, 1, 0 }
  0x15   : > { %p396_p2 = pneg %p669_p13  ;;  %s110_s25 = sshll.u32 %s587_s24, 4  ;;  %s111_s25 = int_to_ptr.vmem [resolvable:$true] %s110_s25 }
  0x16   : > { %p409_p4 = scmp.lt.s32.totalorder %s585_s12, 2  ;;  %p819_p0 = scmp.eq.s32.totalorder %s630_s13, 0 }
  0x17   : > { %s121_s27 = sand.u32 1, %s581_s11   ;;  %s457_s4 = scalar_lea.hbm %s806_s0, 64 }
  0x18   : > { %p679_p7 = pnand %p396_p2, %p819_p0  ;;  %p686_p3 = pnand %p409_p4, %p648_p5 }
  0x19   : > { %s386_s29 = smul.u32 40, %s121_s27  ;;  %p458_p8 = scmp.ne.s32.totalorder %s806_s0, %s457_s4 }
  0x1a   : > { %s821_s28 = scalar_select %p686_p3, 1, 0 }
  0x1b   : > { %p459_p9 = pneg %p679_p7  ;;  %p464_p4 = scmp.lt.u32.totalorder %s457_s4, %s806_s0 }
  0x1d   : > { %p460_p10 = pnand %p459_p9, %p458_p8 }
  0x1f   : > { %p461_p2 = pneg %p460_p10 }
  0x21   : > { %p466_p5 = pnand %p464_p4, %p461_p2 }
  0x23   : > { %469 = shalt.err (!%p466_p5)
}
  0x24   : > { %s470_s14 = scalar_lea.vmem %s111_s25, 64  ;;  %p478_p11 = scmp.lt.s32.totalorder %s111_s25, %s111_s25 }
  0x25   : > { %p471_p0 = scmp.ne.s32.totalorder %s111_s25, %s470_s14  ;;  %p479_p6 = scmp.lt.s32.totalorder %s470_s14, %s470_s14 }
  0x27   : > { %p473_p1 = pnand %p471_p0, %p459_p9  ;;  %p480_p13 = por %p479_p6, %p478_p11 }
  0x29   : > { %p474_p12 = pneg %p473_p1 }
  0x2b   : > { %p481_p3 = pnand %p480_p13, %p474_p12 }
  0x2d   : > { %484 = shalt.err (!%p481_p3)
}
  0x2e   : > { %399 = dma.hbm_to_vmem [thread:$0]  (!%p679_p7), %s806_s0, 64, %s111_s25, [#allocation3]  }
  0x2f   : > { %s384_s19 = sshll.u32 %s585_s12, 7  ;;  %s125_s24 = scalar_lea.vmem [#allocation5], %s386_s29 }
  0x30   : > { %s132_s30 = sshll.u32 %s125_s24, 4  ;;  %s710_s5 = scalar_lea.hbm %s807_s1, %s384_s19  ;;  %s712_s30 = int_to_ptr.vmem [resolvable:$true] %s132_s30 }
  0x31   : > { %s714_s26 = scalar_lea.sflag [#allocation6], %s121_s27  ;;  %s485_s6 = scalar_lea.hbm %s710_s5, 640 }
  0x32   : > { %p486_p6 = scmp.ne.s32.totalorder %s710_s5, %s485_s6  ;;  %p822_p11 = scmp.ne.s32.totalorder %s821_s28, 0 }
  0x33   : > { %s490_s7 = scalar_lea.hbm %s807_s1, 1280  ;;  %p491_p7 = scmp.lt.u32.totalorder %s710_s5, %s807_s1 }
  0x34   : > { %p487_p12 = pneg %p822_p11  ;;  %p492_p3 = scmp.lt.u32.totalorder %s490_s7, %s485_s6 }
  0x35   : > { %p494_p9 = scmp.lt.u32.totalorder %s485_s6, %s710_s5 }
  0x36   : > { %p488_p13 = pnand %p487_p12, %p486_p6  ;;  %p493_p8 = por %p492_p3, %p491_p7 }
  0x38   : > { %p489_p1 = pneg %p488_p13  ;;  %p495_p10 = por %p494_p9, %p493_p8 }
  0x3a   : > { %p496_p2 = pnand %p495_p10, %p489_p1 }
  0x3c   : > { %499 = shalt.err (!%p496_p2)
}
  0x3d   : > { %s500_s27 = scalar_lea.vmem %s712_s30, 640  ;;  %s588_s16 = smov [#allocation5]  }
  0x3e   : > { %p501_p4 = scmp.ne.s32.totalorder %s712_s30, %s500_s27  ;;  %s505_s17 = sshll.u32 %s588_s16, 4  ;;  %s506_s17 = int_to_ptr.vmem [resolvable:$false] %s505_s17 }
  0x3f   : > { %s507_s19 = scalar_lea.vmem %s506_s17, 1280  ;;  %p508_p6 = scmp.lt.s32.totalorder %s712_s30, %s506_s17 }
  0x40   : > { %p503_p5 = pnand %p501_p4, %p487_p12  ;;  %p509_p13 = scmp.lt.s32.totalorder %s507_s19, %s500_s27 }
  0x42   : > { %p504_p0 = pneg %p503_p5  ;;  %p510_p7 = por %p509_p13, %p508_p6 }
  0x44   : > { %p511_p3 = pnand %p510_p7, %p504_p0 }
  0x46   : > { %514 = shalt.err (!%p511_p3)
}
  0x47   : > { %s589_s24 = smov 256   ;;  %s590_s3 = smov 128  }
  0x48   : > { %s591_s4 = smov 8   ;;  %p823_p12 = scmp.ne.s32.totalorder %s818_s23, 0 }
  0x49   : > { %403 = dma.hbm_to_vmem [thread:$0]  (!%p822_p11), %s710_s5, 640, %s712_s30, %s714_s26, %s589_s24, %s590_s3, %s591_s4  }
  0x4a   : > { %144 = sbr.rel (%p823_p12) target bundleno = 329 (0x149), region = 28  ;;  %p824_p1 = scmp.eq.s32.totalorder (!%p823_p12), %s630_s13, 0 }
  0x51   : > { %560 = dma.done.wait (%p824_p1), [#allocation3], 64   ;;  %p825_p8 = pmov %p824_p1 }
  0x52   : > { %s749_s6 = sand.u32 1, %s577_s10   ;;  %p826_p9 = scmp.ne.s32.totalorder %s815_s20, 0 }
  0x53   : > { %562 = vsyncadd (%p825_p8), [#allocation3], 4294967232  ;;  %s387_s25 = smul.u32 40, %s749_s6  ;;  %s151_s29 = scalar_lea.sflag [#allocation6], %s749_s6 }
  0x55   : > { %s154_s7 = scalar_lea.vmem [#allocation5], %s387_s25 }
  0x56   : > { %564 = dma.done.wait (%p826_p9), %s151_s29, 640  }
  0x57   : > { %566 = vsyncadd (%p826_p9), %s151_s29, 4294966656  ;;  %v592_v0 = vmov 0   ;;  %v449_v1 = vld [vmem:[%s154_s7 + $0x4] ss:$8 sps:$4 sm:$0xff]   ;;  %v451_v2 = vld [vmem:[%s154_s7] ss:$8 sps:$4 sm:$0xff]  }
  0x58   : > { %252 = vmatprep.mubr.bf16.mxu0 %v592_v0  ;;  %220 = vmatprep.subr.bf16.mxu0 %v449_v1  ;;  %v452_v3 = vld [vmem:[%s154_s7 + $0x14] ss:$8 sps:$4 sm:$0xff]   ;;  %v183_v4 = vld [vmem:[%s154_s7 + $0x20] sm:$0xff]  ;;  %v454_v5 = vld [vmem:[%s154_s7 + $0x10] ss:$8 sps:$4 sm:$0xff]   ;;  %vm213_vm0 = vcmask 1043456  }
  0x59   : > { %221 = vmatpush1.bf16.msra.mxu0 %v451_v2  ;;  %v376_v6 = vcombine.high %v183_v4, %v183_v4  ;;  %v375_v7 = vcombine.low %v183_v4, %v183_v4  ;;  %v178_v9 = vld [vmem:[#allocation2] sm:$0xf]  ;;  %vm209_vm1 = vcmask 326656   ;;  %s370_s20 = sshll.u32 %s749_s6, 4  ;;  %s385_s23 = sshll.u32 %s630_s13, 8 }
  0x5a   : > { %222 = vmatprep.subr.bf16.mxu0 %v452_v3  ;;  %s174_s28 = scalar_lea.vmem [#allocation7], %s370_s20  ;;  %s762_s8 = scalar_lea.hbm %s808_s2, %s385_s23 }
  0x5b   : > { %v215_v8 = vsel %vm213_vm0, %v375_v7, 0  ;;  %s280_s30 = sshll.u32 %s174_s28, 4  ;;  %s266_s13 = scalar_lea.sflag [#allocation4], %s749_s6  ;;  %s764_s30 = int_to_ptr.vmem [resolvable:$true] %s280_s30 }
  0x5c   : > { %s515_s14 = scalar_lea.vmem %s764_s30, 256  ;;  %p827_p10 = scmp.ne.s32.totalorder %s816_s21, 0 }
  0x5d   : > { %223 = vmatpush1.bf16.msra.mxu0 %v454_v5  ;;  %p516_p11 = scmp.ne.s32.totalorder %s764_s30, %s515_s14  ;;  %s593_s27 = smov [#allocation7]  }
  0x5e   : > { %377 = vmatprep.subr.msk.bf16.mxu0 %vm213_vm0, %v376_v6  ;;  %s519_s16 = sshll.u32 %s593_s27, 4  ;;  %s520_s16 = int_to_ptr.vmem [resolvable:$false] %s519_s16 }
  0x5f   : > { %p517_p2 = pnand %p516_p11, %p827_p10  ;;  %s521_s17 = scalar_lea.vmem %s520_s16, 512 }
  0x60   : > { %p522_p5 = scmp.lt.s32.totalorder %s764_s30, %s520_s16  ;;  %p523_p0 = scmp.lt.s32.totalorder %s521_s17, %s515_s14 }
  0x61   : > { %225 = vmatpush1.bf16.msra.mxu0 %v215_v8  ;;  %p518_p4 = pneg %p517_p2 }
  0x62   : > { %p524_p6 = por %p523_p0, %p522_p5 }
  0x64   : > { %378 = vmatmul.mubr.msk.bf16.vlgmr.msra.gmra.mrb[0].mxu0 %vm209_vm1, %v178_v9  ;;  %p525_p13 = pnand %p524_p6, %p518_p4 }
 0x137   : > { %v254_v10 = vpop.f32.mrb[0].mxu0 }
 0x138   : > { %v261_v11 = vmax.f32 %v254_v10, 0.0  ;;  %v256_v12 = vpop.f32.mrb[1].mxu0 }
 0x139   : > { %v262_v13 = vmax.f32 %v256_v12, 0.0  ;;  %v258_v14 = vpop.f32.mrb[2].mxu0 }
 0x13a   : > { %263 = vst [vmem:[%s174_s28] sm:$0xff] %v261_v11  ;;  %v259_v15 = vpop.f32.mrb[3].mxu0 }
 0x13b   : > { %264 = vst [vmem:[%s174_s28 + $0x8] sm:$0xff] %v262_v13 }
 0x13c   : > { %528 = shalt.err (!%p525_p13)
}
 0x13d   : > { %s529_s19 = scalar_lea.hbm %s762_s8, 256  ;;  %s533_s4 = scalar_lea.hbm %s808_s2, 512 }
 0x13e   : > { %p530_p7 = scmp.ne.s32.totalorder %s762_s8, %s529_s19  ;;  %p534_p1 = scmp.lt.u32.totalorder %s762_s8, %s808_s2 }
 0x13f   : > { %p535_p8 = scmp.lt.u32.totalorder %s533_s4, %s529_s19  ;;  %p537_p11 = scmp.lt.u32.totalorder %s529_s19, %s762_s8 }
 0x140   : > { %p531_p3 = pnand %p530_p7, %p827_p10 }
 0x141   : > { %p536_p9 = por %p535_p8, %p534_p1 }
 0x142   : > { %p532_p12 = pneg %p531_p3 }
 0x143   : > { %p538_p2 = por %p537_p11, %p536_p9 }
 0x145   : > { %p539_p4 = pnand %p538_p2, %p532_p12 }
 0x147   : > { %542 = shalt.err (!%p539_p4)
}
 0x148   : > { %394 = dma.vmem_to_hbm [thread:$0]  (%p827_p10), %s764_s30, 256, %s762_s8, %s266_s13  }
 0x149 PF: > { %s292_s29 = sand.u32 1, %s573_s9   ;;  %p828_p5 = scmp.ne.s32.totalorder %s817_s22, 0 }
 0x14a   : > { %p829_p0 = scmp.ge.s32.totalorder %s585_s12, 2  ;;  %s293_s7 = scalar_lea.sflag [#allocation4], %s292_s29 }
 0x14c   : > { %p405_p6 = pnand %p829_p0, %p828_p5 }
 0x14e   : > { %568 = dma.done.wait (!%p405_p6), %s293_s7, 256  }
 0x14f   : > { %570 = vsyncadd (!%p405_p6), %s293_s7, 4294967040  ;;  %p16_p13 = scmp.ge.s32.totalorder %s634_s15, 4   ;;  %s830_s9 = smov %s577_s10 }
 0x150   : > { %s831_s10 = smov %s581_s11  ;;  %s832_s11 = smov %s646_s18 }
 0x151   : > { %s833_s12 = smov %s634_s15  ;;  %18 = sbr.rel (!%p16_p13) target bundleno = 6 (0x6), region = 78 }
 0x158   :  { %298 = vsyncpa [#allocation3], 1 }
 0x159   :  { %300 = vsyncpa [#allocation3 + $0x1], 1 }
 0x15a   :  { %301 = vsyncpa [#allocation6], 1 }
 0x15b   :  { %303 = vsyncpa [#allocation6 + $0x1], 1 }
 0x15c   :  { %304 = vsyncpa [#allocation4], 1 }
 0x15d   :  { %306 = vsyncpa [#allocation4 + $0x1], 1 }

</bundles_post_ra>
